<compile_context>
chip_gen: v7x
topology: tpu7x:2x2x1
jax: 0.10.0
libtpu: 0.0.40
codegen_flags: <defaults>
</compile_context>

<pallas_src>
import functools

import jax
import jax.numpy as jnp
from jax.experimental import pallas as pl
from jax.experimental.pallas import tpu as pltpu


# ---------------------------------------------------------------------------
# Kernel
# ---------------------------------------------------------------------------
def _rmsnorm_kernel(x_ref, w_ref, o_ref, *, eps, inv_hidden):
    # x_ref: (block_rows, Hp), w_ref: (1, Hp), o_ref: (block_rows, Hp)
    x = x_ref[...]
    xf = x.astype(jnp.float32)                                   # x.float()
    # sum * (1/true_hidden) instead of mean: identical numerics for unpadded
    # hidden, and stays correct when the hidden axis is zero-padded to 128.
    ms = jnp.sum(xf * xf, axis=-1, keepdims=True) * inv_hidden   # pow(2).mean(-1)
    normed = (xf * jax.lax.rsqrt(ms + eps)).astype(x.dtype)      # rsqrt (EUP), .type_as(x)
    o_ref[...] = (normed * w_ref[...]).astype(o_ref.dtype)       # * weight


# ---------------------------------------------------------------------------
# Sizing helpers
# ---------------------------------------------------------------------------
def _round_up(n, m):
    return ((n + m - 1) // m) * m


def _cdiv(a, b):
    return -(-a // b)


def _vmem_capacity_bytes():
    """Physical VMEM per core, with a conservative fallback."""
    try:
        return int(pltpu.get_tpu_info().vmem_capacity_bytes)
    except Exception:
        return 64 << 20  # assume the tightest generation (v7x) if unknown


def _gen_config():
    """Generation-aware tiling knobs.

    Returns (target_block_bytes, vmem_cap):
      target_block_bytes: per-block *working set* budget (in + out + f32 temps)
      vmem_cap:           upper bound on the scoped-VMEM request
    """
    cap = _vmem_capacity_bytes()
    # v5e/v6e: 128 MiB physical -> ~32 MiB working set, 96 MiB scoped cap.
    # v7x:      64 MiB physical -> ~16 MiB working set, 48 MiB scoped cap.
    target_block_bytes = max(8 << 20, cap // 4)
    vmem_cap = min(96 << 20, (cap * 3) // 4)
    return target_block_bytes, vmem_cap


def _choose_block_rows(n_rows, hidden, in_itemsize, out_itemsize,
                       target_block_bytes):
    """Pick a row-block size from a VMEM working-set budget, sublane aligned."""
    # Full sublane packing: 8 rows for 32-bit, 16 for 16-bit, 32 for 8-bit.
    min_itemsize = max(1, min(in_itemsize, out_itemsize))
    sublane = max(8, 32 // min_itemsize)

    # Per-row working set: input + output + one f32 intermediate (the kernel
    # keeps an f32 copy of the block live across the lane reduction).
    row_bytes = max(1, hidden * (in_itemsize + out_itemsize + 4))
    rows = max(target_block_bytes // row_bytes, sublane)
    rows = (rows // sublane) * sublane

    # Never request more rows than the (sublane-padded) array has.
    rows = min(rows, _round_up(n_rows, sublane))
    if rows >= n_rows:
        # Single block covering all rows; exact row count is legal since a
        # block dim may equal the full array dim even if not sublane-aligned.
        rows = n_rows
    return max(rows, 1), sublane


# Only lane-pad hidden when the extra HBM traffic is small (<= ~12.5%);
# padding a tiny hidden (e.g. 32 -> 128) would multiply the bandwidth cost.
_PAD_OVERHEAD_MAX = 1.125


# ---------------------------------------------------------------------------
# Wrapper
# ---------------------------------------------------------------------------
def rmsnorm(x, weight, eps=1e-6, block_rows=None):
    """RMSNorm forward matching the PyTorch module semantics.

    x: (..., hidden); weight: (hidden,)
    """
    orig_shape = x.shape
    hidden = orig_shape[-1]
    assert weight.shape == (hidden,)

    x2 = x.reshape(-1, hidden)
    n_rows = x2.shape[0]

    # PyTorch promotion of (normed.type_as(x) * weight)
    out_dtype = jnp.result_type(x.dtype, weight.dtype)

    in_itemsize = jnp.dtype(x.dtype).itemsize
    out_itemsize = jnp.dtype(out_dtype).itemsize
    w_itemsize = jnp.dtype(weight.dtype).itemsize

    # --- optional lane-dense padding of the hidden axis --------------------
    hp = _round_up(hidden, 128)
    do_pad = (hp != hidden) and (hp <= hidden * _PAD_OVERHEAD_MAX)
    if do_pad:
        x2 = jnp.pad(x2, ((0, 0), (0, hp - hidden)))
        w2 = jnp.pad(weight, (0, hp - hidden)).reshape(1, hp)
    else:
        hp = hidden
        w2 = weight.reshape(1, hp)

    # --- tile selection (generation aware) ---------------------------------
    target_block_bytes, vmem_cap = _gen_config()
    auto = block_rows is None
    if auto:
        block_rows, sublane = _choose_block_rows(
            n_rows, hp, in_itemsize, out_itemsize, target_block_bytes)
        # Guarantee enough grid steps to feed both v7x TensorCores on medium
        # inputs; at most ~1 us of extra per-step overhead on 1-TC chips.
        min_blocks = 4
        if n_rows >= min_blocks * sublane:
            cand = _round_up(_cdiv(n_rows, min_blocks), sublane)
            block_rows = min(block_rows, cand)
    block_rows = max(1, min(block_rows, n_rows))

    grid = (_cdiv(n_rows, block_rows),)

    # --- VMEM budget: double-buffered in/out blocks + f32 temps + weight ----
    block_in_bytes = block_rows * hp * in_itemsize
    block_out_bytes = block_rows * hp * out_itemsize
    block_tmp_bytes = block_rows * hp * 4            # f32 intermediates
    w_bytes = hp * w_itemsize
    vmem_need = 2 * (block_in_bytes + block_out_bytes) + 2 * block_tmp_bytes + w_bytes
    vmem_limit = min(max(int(vmem_need * 1.25), 32 << 20), vmem_cap)

    total_in_bytes = n_rows * hp * in_itemsize
    total_out_bytes = n_rows * hp * out_itemsize
    cost = pl.CostEstimate(
        flops=4 * n_rows * hidden,          # square, sum-accum, rsqrt-scale, weight-mul
        transcendentals=n_rows,             # one rsqrt per row
        bytes_accessed=total_in_bytes + total_out_bytes + w_bytes,
    )

    kernel = functools.partial(
        _rmsnorm_kernel, eps=float(eps), inv_hidden=1.0 / float(hidden))

    out = pl.pallas_call(
        kernel,
        out_shape=jax.ShapeDtypeStruct((n_rows, hp), out_dtype),
        grid_spec=pltpu.PrefetchScalarGridSpec(
            num_scalar_prefetch=0,
            grid=grid,
            in_specs=[
                pl.BlockSpec((block_rows, hp), lambda i: (i, 0)),
                pl.BlockSpec((1, hp), lambda i: (0, 0)),   # weight resident
            ],
            out_specs=pl.BlockSpec((block_rows, hp), lambda i: (i, 0)),
        ),
        compiler_params=pltpu.CompilerParams(
            dimension_semantics=("parallel",),   # megacore-sharded on v7x
            vmem_limit_bytes=vmem_limit,
        ),
        cost_estimate=cost,
    )(x2, w2)

    if do_pad:
        out = out[:, :hidden]
    return out.reshape(orig_shape)


# ---------------------------------------------------------------------------
# Reference & tests
# ---------------------------------------------------------------------------
def rmsnorm_ref(x, weight, eps=1e-6):
    xf = x.astype(jnp.float32)
    normed = xf * jax.lax.rsqrt(jnp.mean(xf * xf, axis=-1, keepdims=True) + eps)
    return normed.astype(x.dtype) * weight


if __name__ == "__main__":
    key = jax.random.PRNGKey(0)
    kx, kw, kx2, kx3, kx4, kw4 = jax.random.split(key, 6)

    batch, seq, hidden = 2, 8, 32
    x = jax.random.normal(kx, (batch, seq, hidden), dtype=jnp.float32)

    # Module __init__ sets weight = ones(hidden). Use ones + small perturbation
    # to exercise the scale path.
    weight = jnp.ones((hidden,), dtype=jnp.float32) + 0.01 * jax.random.normal(
        kw, (hidden,), dtype=jnp.float32
    )

    out = jax.block_until_ready(rmsnorm(x, weight))
    ref = rmsnorm_ref(x, weight)
    assert out.shape == x.shape
    assert jnp.allclose(out, ref, atol=1e-5, rtol=1e-5), "f32 mismatch vs reference"

    # Ragged row count (15 rows, not a multiple of 8) exercises the cdiv /
    # single-full-block path.
    x_rag = jax.random.normal(kx2, (3, 5, hidden), dtype=jnp.float32)
    out_rag = jax.block_until_ready(rmsnorm(x_rag, weight))
    assert jnp.allclose(out_rag, rmsnorm_ref(x_rag, weight), atol=1e-5, rtol=1e-5), \
        "ragged-rows mismatch vs reference"

    # bf16 input exercises the .type_as(x) cast path and 16-row sublane packing.
    x_bf16 = jax.random.normal(kx3, (batch, seq, hidden), dtype=jnp.float32).astype(jnp.bfloat16)
    out_bf16 = jax.block_until_ready(rmsnorm(x_bf16, weight))
    assert jnp.allclose(out_bf16.astype(jnp.float32),
                        rmsnorm_ref(x_bf16, weight).astype(jnp.float32),
                        atol=2e-2, rtol=2e-2), "bf16 mismatch vs reference"

    # Non-128-multiple hidden large enough to take the lane-padding path
    # (1160 -> 1280, ~10% pad overhead); checks sum*(1/H) against mean().
    hidden_pad = 1160
    x_pad = jax.random.normal(kx4, (2, 4, hidden_pad), dtype=jnp.float32)
    w_pad = jnp.ones((hidden_pad,), dtype=jnp.float32) + 0.01 * jax.random.normal(
        kw4, (hidden_pad,), dtype=jnp.float32
    )
    out_pad = jax.block_until_ready(rmsnorm(x_pad, w_pad))
    assert jnp.allclose(out_pad, rmsnorm_ref(x_pad, w_pad), atol=1e-5, rtol=1e-5), \
        "padded-hidden mismatch vs reference"

    print("KERNEL_OK")
</pallas_src>

<mosaic_0001>
module attributes {stable_mosaic.version = 11 : i64} {
  func.func @_rmsnorm_kernel(%arg0: i32, %arg1: memref<16x32xf32, #tpu.memory_space<vmem>>, %arg2: memref<1x32xf32, #tpu.memory_space<vmem>>, %arg3: memref<16x32xf32, #tpu.memory_space<vmem>>) attributes {dimension_semantics = [#tpu.dimension_semantics<parallel>], iteration_bounds = array<i64: 1>, scalar_prefetch = 0 : i64, scratch_operands = 0 : i64, tpu.core_type = #tpu.core_type<tc>, window_params = [{transform_indices = @transform_0, window_bounds = array<i64: 16, 32>}, {pipeline_mode = #tpu.pipeline_mode<synchronous>, transform_indices = @transform_1, window_bounds = array<i64: 1, 32>}, {transform_indices = @transform_2, window_bounds = array<i64: 16, 32>}]} {
    %c0 = arith.constant 0 : index
    %c0_0 = arith.constant 0 : index
    %0 = vector.load %arg1[%c0, %c0_0] : memref<16x32xf32, #tpu.memory_space<vmem>>, vector<16x32xf32>
    %1 = arith.mulf %0, %0 : vector<16x32xf32>
    %cst = arith.constant dense<0.000000e+00> : vector<16xf32>
    %2 = vector.multi_reduction <add>, %1, %cst [1] : vector<16x32xf32> to vector<16xf32>
    %3 = vector.shape_cast %2 : vector<16xf32> to vector<16x1xf32>
    %cst_1 = arith.constant 3.125000e-02 : f32
    %4 = vector.broadcast %cst_1 : f32 to vector<16x1xf32>
    %5 = arith.mulf %3, %4 : vector<16x1xf32>
    %cst_2 = arith.constant 9.99999997E-7 : f32
    %6 = vector.broadcast %cst_2 : f32 to vector<16x1xf32>
    %7 = arith.addf %5, %6 : vector<16x1xf32>
    %8 = math.rsqrt %7 : vector<16x1xf32>
    %9 = vector.broadcast %8 : vector<16x1xf32> to vector<16x32xf32>
    %10 = arith.mulf %0, %9 : vector<16x32xf32>
    %c0_3 = arith.constant 0 : index
    %c0_4 = arith.constant 0 : index
    %11 = vector.load %arg2[%c0_3, %c0_4] : memref<1x32xf32, #tpu.memory_space<vmem>>, vector<1x32xf32>
    %12 = vector.broadcast %11 : vector<1x32xf32> to vector<16x32xf32>
    %13 = arith.mulf %10, %12 : vector<16x32xf32>
    %c0_5 = arith.constant 0 : index
    %c0_6 = arith.constant 0 : index
    %14 = vector.load %arg3[%c0_5, %c0_6] : memref<16x32xf32, #tpu.memory_space<vmem>>, vector<16x32xf32>
    tpu.vector_store %arg3[%c0_5, %c0_6], %13 {strides = array<i32>} : memref<16x32xf32, #tpu.memory_space<vmem>>, vector<16x32xf32>,
    return
  }
  func.func @transform_0(%arg0: i32) -> (i32, i32) {
    %c0_i32 = arith.constant 0 : i32
    %c0_i32_0 = arith.constant 0 : i32
    return %arg0, %c0_i32 : i32, i32
  }
  func.func @transform_1(%arg0: i32) -> (i32, i32) {
    %c0_i32 = arith.constant 0 : i32
    %c0_i32_0 = arith.constant 0 : i32
    %c0_i32_1 = arith.constant 0 : i32
    return %c0_i32, %c0_i32_0 : i32, i32
  }
  func.func @transform_2(%arg0: i32) -> (i32, i32) {
    %c0_i32 = arith.constant 0 : i32
    %c0_i32_0 = arith.constant 0 : i32
    return %arg0, %c0_i32 : i32, i32
  }
}

</mosaic_0001>

<bundles_post_ra>
// kernel: tpu_custom_call.1
= control target key start
LH: loop header
LB: loop body
LE: loop exit
PB: predicated region body
PF: predicated region fallthrough
CT: control target
= control target key end

     0   :  { %7 = vsyncpa [#allocation3], 0  ;;  %s186_s0 = inlined_call_operand.hbm [shape: f32[16,32], index: 0, kind: input, shape index: {}]   ;;  %s187_s1 = inlined_call_operand.vmem [shape: f32[1,32], index: 1, kind: input, shape index: {}]   ;;  %s188_s2 = inlined_call_operand.hbm [shape: f32[16,32], index: 2, kind: output, shape index: {}]  }
   0x1   :  { %8 = vsyncpa [#allocation4], 0  ;;  %s130_s9 = smov [#allocation2]   ;;  %s82_s13 = scalar_lea.hbm %s186_s0, 256 }
   0x2   :  { %s14_s10 = sshll.u32 %s130_s9, 4  ;;  %p83_p0 = scmp.ne.s32.totalorder %s186_s0, %s82_s13  ;;  %s15_s10 = int_to_ptr.vmem [resolvable:$true] %s14_s10 }
   0x3   :  { %p86_p1 = scmp.lt.u32.totalorder %s82_s13, %s186_s0 }
   0x5   :  { %p88_p2 = pnand %p86_p1, %p83_p0 }
   0x7   :  { %91 = shalt.err (!%p88_p2)
}
   0x8   :  { %s92_s18 = scalar_lea.vmem %s15_s10, 256  ;;  %p97_p4 = scmp.lt.s32.totalorder %s15_s10, %s15_s10 }
   0x9   :  { %p93_p3 = scmp.ne.s32.totalorder %s15_s10, %s92_s18  ;;  %p98_p5 = scmp.lt.s32.totalorder %s92_s18, %s92_s18 }
   0xb   :  { %p99_p6 = por %p98_p5, %p97_p4 }
   0xd   :  { %p100_p7 = pnand %p99_p6, %p93_p3 }
   0xf   :  { %103 = shalt.err (!%p100_p7)
}
  0x10   :  { %s131_s19 = smov 128   ;;  %s132_s20 = smov 8  }
  0x11   :  { %20 = dma.hbm_to_vmem [thread:$0]  %s186_s0, 256, %s15_s10, [#allocation3], %s131_s19, %s131_s19, %s132_s20  }
  0x12   :  { %126 = dma.done.wait [#allocation3], 256  }
  0x13   :  { %127 = vsyncadd [#allocation3], 4294967040  ;;  %v26_v0 = vld [vmem:[#allocation2] sm:$0xff]  ;;  %vm30_vm0 = vcmask 261120   ;;  %v27_v1 = vld [vmem:[#allocation2 + $0x8] sm:$0xff]  ;;  %s133_s24 = smov [#allocation5]  }
  0x14   :  { %v28_v2 = vmul.f32 %v26_v0, %v26_v0  ;;  %v29_v3 = vmul.f32 %v27_v1, %v27_v1  ;;  %v73_v13 = vld [vmem:[%s187_s1] ss:$0 sm:$0xff]  ;;  %s61_s25 = sshll.u32 %s133_s24, 4  ;;  %s62_s25 = int_to_ptr.vmem [resolvable:$true] %s61_s25 }
  0x15   :  { %s104_s26 = scalar_lea.vmem %s62_s25, 256  ;;  %p109_p9 = scmp.lt.s32.totalorder %s62_s25, %s62_s25 }
  0x16   :  { %v31_v4 = vsel %vm30_vm0, %v28_v2, 0.0  ;;  %v34_v5 = vsel %vm30_vm0, %v29_v3, 0.0  ;;  %p105_p8 = scmp.ne.s32.totalorder %s62_s25, %s104_s26  ;;  %p110_p10 = scmp.lt.s32.totalorder %s104_s26, %s104_s26 }
  0x17   :  { %32 = vadd.xlane.f32.xlu0 %v31_v4 }
  0x18   :  { %p111_p11 = por %p110_p10, %p109_p9 }
  0x1a   :  { %p112_p12 = pnand %p111_p11, %p105_p8 }
  0x1b   :  { %35 = vadd.xlane.f32.xlu0 %v34_v5 }
  0xa4   :  { %v33_v6 = vpop.xlane.xlu0 %32 }
  0xa5   :  { %v37_v7 = vmul.f32 0.03125, %v33_v6 }
  0xa7   :  { %v39_v8 = vadd.f32 1e-06, %v37_v7 }
  0xa8   :  { %v36_v9 = vpop.xlane.xlu0 %35 }
  0xa9   :  { %78 = vrsqrt.f32 %v39_v8  ;;  %v38_v10 = vmul.f32 0.03125, %v36_v9 }
  0xab   :  { %v40_v11 = vadd.f32 1e-06, %v38_v10 }
  0xad   :  { %80 = vrsqrt.f32 %v40_v11 }
  0xb3   :  { %v79_v12 = vpop.eup %78 }
  0xb4   :  { %v43_v14 = vmul.f32 %v79_v12, %v26_v0 }
  0xb6   :  { %v52_v15 = vmul.f32 %v73_v13, %v43_v14 }
  0xb7   :  { %v81_v16 = vpop.eup %80 }
  0xb8   :  { %v44_v17 = vmul.f32 %v81_v16, %v27_v1  ;;  %54 = vst.msk [vmem:[#allocation5] sm:$0xff] %vm30_vm0, %v52_v15 }
  0xba   :  { %v53_v18 = vmul.f32 %v73_v13, %v44_v17 }
  0xbc   :  { %55 = vst.msk [vmem:[#allocation5 + $0x8] sm:$0xff] %vm30_vm0, %v53_v18 }
  0xbd   :  { %115 = shalt.err (!%p112_p12)
}
  0xbe   :  { %s116_s28 = scalar_lea.hbm %s188_s2, 256 }
  0xbf   :  { %p117_p13 = scmp.ne.s32.totalorder %s188_s2, %s116_s28  ;;  %p120_p0 = scmp.lt.u32.totalorder %s116_s28, %s188_s2 }
  0xc1   :  { %p122_p1 = pnand %p120_p0, %p117_p13 }
  0xc3   :  { %125 = shalt.err (!%p122_p1)
}
  0xc4   :  { %67 = dma.vmem_to_hbm [thread:$0]  %s62_s25, 256, %s188_s2, [#allocation4], %s131_s19, %s131_s19, %s132_s20  }
  0xc5   :  { %128 = dma.done.wait [#allocation4], 256  }
  0xc6   :  { %129 = vsyncadd [#allocation4], 4294967040 }
  0xc7   :  { %71 = vsyncpa [#allocation3], 1 }
  0xc8   :  { %72 = vsyncpa [#allocation4], 1 }

</bundles_post_ra>
